<compile_context>
chip_gen: v5e
topology: v5e:2x2
jax: 0.10.0
libtpu: 0.0.40
codegen_flags: <defaults>
</compile_context>

<pallas_src>
import functools

import numpy as np
import jax
import jax.numpy as jnp
from jax.experimental import pallas as pl
from jax.experimental.pallas import tpu as pltpu


# tap order shared by the kernel, the packed conv weight and the masks.
_TAPS = tuple((dy, dx) for dy in (-1, 0, 1) for dx in (-1, 0, 1))


def _prelu(v, a):
    return jnp.where(v >= 0, v, a * v)


def _shift_cols(x, d):
    """out[:, i] = x[:, (i + d) % n] (circular; caller masks invalid cols).

    NOTE: assumes stride-1 / pad-1 / 3x3 flattened-shift trick with W >= 2.
    """
    n = x.shape[1]
    s = d % n
    if s == 0:
        return x
    return jnp.concatenate([x[:, s:], x[:, :s]], axis=1)


def _slab_layout(c_in, c_out):
    """Column offsets of the packed small-constant slab (rows = 2*c_out)."""
    off = {}
    off["wcat"] = 0                          # (c_out, 9*c_in)
    off["w2t"] = off["wcat"] + 9 * c_in      # (2*c_out, c_out)   Linear2^T
    off["wfg"] = off["w2t"] + c_out          # (c_out, c_out)     4 fused 1x1
    off["bconv"] = off["wfg"] + c_out        # column (c_out, 1)
    off["b1"] = off["bconv"] + 1             # column (2*c_out, 1)
    off["bfg"] = off["b1"] + 1               # column (c_out, 1)
    off["afg"] = off["bfg"] + 1              # column (c_out, 1)  group alphas
    off["b2"] = off["afg"] + 1               # row    (1, c_out)
    off["alpha"] = off["b2"] + c_out         # row 0: a_local, a_g1, a_g2
    off["width"] = off["alpha"] + 3
    return off


# ----------------------------- Pallas kernel --------------------------------
def _gfb_kernel(C_in, C_out, W, BT, L,
                x_ref,      # (BT, C_in, HW)        input images (flattened hw)
                masks_ref,  # (9, HW)               per-tap row+col validity
                w1_ref,     # (C_in, 2*C_out, HW)   pool-pyramid (x) Linear1
                slab_ref,   # (2*C_out, L["width"]) packed small constants
                out_ref,    # (BT, C_out, HW)
                stk_ref):   # VMEM scratch (9*C_in, HW) shifted-x stack

    slab = slab_ref[...]
    wcat = slab[:C_out, L["wcat"]:L["wcat"] + 9 * C_in]      # (C_out, 9*C_in)
    w2t = slab[:, L["w2t"]:L["w2t"] + C_out]                 # (2C, C_out)
    wfg = slab[:C_out, L["wfg"]:L["wfg"] + C_out]            # (C_out, C_out)
    bconv = slab[:C_out, L["bconv"]:L["bconv"] + 1]          # (C_out, 1)
    b1 = slab[:, L["b1"]:L["b1"] + 1]                        # (2C, 1)
    bfg = slab[:C_out, L["bfg"]:L["bfg"] + 1]                # (C_out, 1)
    afg = slab[:C_out, L["afg"]:L["afg"] + 1]                # (C_out, 1)
    b2 = slab[0:1, L["b2"]:L["b2"] + C_out]                  # (1, C_out)
    a_loc = slab[0:1, L["alpha"] + 0:L["alpha"] + 1]         # (1, 1)
    a_g1 = slab[0:1, L["alpha"] + 1:L["alpha"] + 2]          # (1, 1)
    a_g2 = slab[0:1, L["alpha"] + 2:L["alpha"] + 3]          # (1, 1)

    for b in range(BT):                                       # static unroll
        x_img = x_ref[b]                                      # (C_in, HW)

        # ---- local 3x3 conv: 9 masked circular shifts -> one MXU matmul ----
        for t, (dy, dx) in enumerate(_TAPS):
            shifted = _shift_cols(x_img, dy * W + dx)
            stk_ref[t * C_in:(t + 1) * C_in, :] = (
                shifted * masks_ref[t:t + 1, :])
        conv = jnp.dot(wcat, stk_ref[...],
                       preferred_element_type=jnp.float32)    # (C_out, HW)
        local = _prelu(conv + bconv, a_loc)

        # ---- global branch: pool pyramid (x) MLP, column/row oriented ------
        # layer 1 (K = C_in*HW) as broadcast-multiply + reductions, weights
        # stored lane-dense; result is a (2C, 1) column (no transposes).
        s = w1_ref[0] * x_img[0:1, :]                         # (2C, HW)
        for c in range(1, C_in):
            s = s + w1_ref[c] * x_img[c:c + 1, :]
        h1 = jnp.sum(s, axis=1, keepdims=True) + b1           # (2C, 1)
        h1 = _prelu(h1, a_g1)
        h2 = jnp.sum(w2t * h1, axis=0, keepdims=True) + b2    # (1, C_out)
        h2 = _prelu(h2, a_g2)
        g = jnp.sum(wfg * h2, axis=1, keepdims=True) + bfg    # (C_out, 1)
        g = _prelu(g, afg)                                    # per-group alphas

        out_ref[b] = local + g                                # lane-broadcast


# ------------------------------- glue / setup -------------------------------
def adaptive_pool_matrix(n, p):
    """1-D adaptive average pooling matrix (p, n), matching PyTorch bins."""
    m = np.zeros((p, n), dtype=np.float32)
    for i in range(p):
        s = (i * n) // p
        e = -((-(i + 1) * n) // p)  # ceil((i+1)*n/p)
        m[i, s:e] = 1.0 / (e - s)
    return m


def build_w1eff(w1, c_in, H, W, pool_sizes):
    """Fuse the adaptive-pool pyramid with the first Linear (lane-dense).

    Returns W1eff (c_in, 2*C_out, H*W) with
      h1[j] = sum_{c,hw} x[c, hw] * W1eff[c, j, hw]   (+ b1).
    """
    two_c = w1.shape[0]
    HW = H * W
    out = np.zeros((c_in, two_c, HW), dtype=np.float32)
    off = 0
    for p in pool_sizes:
        n = p * p
        M = np.kron(adaptive_pool_matrix(H, p),
                    adaptive_pool_matrix(W, p))                # (n, HW)
        blk = w1[:, off:off + c_in * n].reshape(two_c, c_in, n)
        out += np.einsum("jcn,nh->cjh", blk, M)
        off += c_in * n
    return out.astype(np.float32)


def improved_global_feature_block(x, params, pool_sizes=(1, 3, 6),
                                  batch_tile=None):
    B, C_in, H, W = x.shape
    C_out = params["wconv"].shape[0]
    HW = H * W
    Cq = C_out // 4

    if batch_tile is None or B % batch_tile != 0:
        # two grid steps by default (feeds both v7x TensorCores) while still
        # folding the batch so v6e/v5e pay few per-step overheads.
        batch_tile = (B // 2) if (B >= 2 and B % 2 == 0) else 1
    nbt = B // batch_tile

    x3 = x.astype(jnp.float32).reshape(B, C_in, HW)           # free reshape

    # ---- host-side constant packing (pure numpy, no HBM-resident im2col) ---
    wconv = np.asarray(params["wconv"], np.float32)            # (C_out,C_in,3,3)
    wcat = np.zeros((C_out, 9 * C_in), np.float32)
    ys, xs_ = np.divmod(np.arange(HW), W)
    tap_masks = np.zeros((9, HW), np.float32)
    for t, (dy, dx) in enumerate(_TAPS):
        wcat[:, t * C_in:(t + 1) * C_in] = wconv[:, :, dy + 1, dx + 1]
        tap_masks[t] = ((ys + dy >= 0) & (ys + dy < H) &
                        (xs_ + dx >= 0) & (xs_ + dx < W))

    w1e3 = build_w1eff(np.asarray(params["w1"], np.float32),
                       C_in, H, W, list(pool_sizes))           # (C_in, 2C, HW)

    w2T = np.asarray(params["w2"], np.float32).T               # (2C, C_out)
    wfg_stk = np.concatenate([np.asarray(wg, np.float32).reshape(Cq, C_out)
                              for wg in params["wg"]], axis=0)  # (C_out, C_out)
    bfg = np.concatenate([np.asarray(bg, np.float32).reshape(Cq)
                          for bg in params["bg"]])              # (C_out,)
    afg = np.concatenate([np.full((Cq,), float(a), np.float32)
                          for a in params["a_fg"]])             # (C_out,)

    L = _slab_layout(C_in, C_out)
    slab = np.zeros((2 * C_out, L["width"]), np.float32)
    slab[:C_out, L["wcat"]:L["wcat"] + 9 * C_in] = wcat
    slab[:, L["w2t"]:L["w2t"] + C_out] = w2T
    slab[:C_out, L["wfg"]:L["wfg"] + C_out] = wfg_stk
    slab[:C_out, L["bconv"]] = np.asarray(params["bconv"], np.float32)
    slab[:, L["b1"]] = np.asarray(params["b1"], np.float32)
    slab[:C_out, L["bfg"]] = bfg
    slab[:C_out, L["afg"]] = afg
    slab[0, L["b2"]:L["b2"] + C_out] = np.asarray(params["b2"], np.float32)
    slab[0, L["alpha"] + 0] = float(params["a_local"])
    slab[0, L["alpha"] + 1] = float(params["a_g1"])
    slab[0, L["alpha"] + 2] = float(params["a_g2"])

    kernel = functools.partial(_gfb_kernel, C_in, C_out, W, batch_tile, L)

    out = pl.pallas_call(
        kernel,
        out_shape=jax.ShapeDtypeStruct((B, C_out, HW), jnp.float32),
        grid=(nbt,),
        in_specs=[
            pl.BlockSpec((batch_tile, C_in, HW), lambda i: (i, 0, 0)),   # x
            pl.BlockSpec((9, HW), lambda i: (0, 0)),                     # masks
            pl.BlockSpec((C_in, 2 * C_out, HW), lambda i: (0, 0, 0)),    # w1eff
            pl.BlockSpec((2 * C_out, L["width"]), lambda i: (0, 0)),     # slab
        ],
        out_specs=pl.BlockSpec((batch_tile, C_out, HW), lambda i: (i, 0, 0)),
        scratch_shapes=[pltpu.VMEM((9 * C_in, HW), jnp.float32)],
        compiler_params=pltpu.CompilerParams(
            dimension_semantics=("parallel",),
            vmem_limit_bytes=32 * 1024 * 1024),
    )(x3, jnp.asarray(tap_masks), jnp.asarray(w1e3), jnp.asarray(slab))

    # (B, C_out, HW) -> NCHW is a free reshape (lane-dense output layout).
    return out.reshape(B, C_out, H, W)


# ------------------------------ pure-JAX reference --------------------------
def reference(x, params, pool_sizes=(1, 3, 6)):
    B, C_in, H, W = x.shape
    C_out = params["wconv"].shape[0]
    lf = jax.lax.conv_general_dilated(
        x, params["wconv"], window_strides=(1, 1), padding=((1, 1), (1, 1)),
        dimension_numbers=("NCHW", "OIHW", "NCHW"))
    lf = _prelu(lf + params["bconv"][None, :, None, None], params["a_local"])

    feats = []
    for p in pool_sizes:
        R = jnp.asarray(adaptive_pool_matrix(H, p))
        Cm = jnp.asarray(adaptive_pool_matrix(W, p))
        pooled = jnp.einsum("ih,jw,bchw->bcij", R, Cm, x)
        feats.append(pooled.reshape(B, -1))
    gf = jnp.concatenate(feats, axis=1)
    h1 = _prelu(gf @ params["w1"].T + params["b1"], params["a_g1"])
    h2 = _prelu(h1 @ params["w2"].T + params["b2"], params["a_g2"])
    groups = []
    for g in range(4):
        wg = params["wg"][g].reshape(-1, C_out)
        groups.append(_prelu(h2 @ wg.T + params["bg"][g], params["a_fg"][g]))
    gctx = jnp.concatenate(groups, axis=1)                    # (B, C_out)
    return lf + gctx[:, :, None, None]


# ------------------------------------ main -----------------------------------
if __name__ == "__main__":
    B, C_IN, C_OUT, H, W = 2, 4, 8, 16, 16
    POOL_SIZES = (1, 3, 6)
    P_TOTAL = sum(p * p for p in POOL_SIZES)   # 46

    key = jax.random.PRNGKey(0)
    ks = jax.random.split(key, 16)

    def init(k, shape, scale=0.1):
        return scale * jax.random.normal(k, shape, dtype=jnp.float32)

    params = {
        "wconv": init(ks[0], (C_OUT, C_IN, 3, 3)),
        "bconv": init(ks[1], (C_OUT,)),
        "a_local": jnp.float32(0.25),
        "w1": init(ks[2], (2 * C_OUT, C_IN * P_TOTAL), 0.05),
        "b1": init(ks[3], (2 * C_OUT,), 0.05),
        "a_g1": jnp.float32(0.2),
        "w2": init(ks[4], (C_OUT, 2 * C_OUT), 0.05),
        "b2": init(ks[5], (C_OUT,), 0.05),
        "a_g2": jnp.float32(0.3),
        "wg": [init(ks[6 + g], (C_OUT // 4, C_OUT, 1, 1)) for g in range(4)],
        "bg": [init(ks[10 + g], (C_OUT // 4,)) for g in range(4)],
        "a_fg": [jnp.float32(v) for v in (0.25, 0.15, 0.35, 0.05)],
    }
    x = jax.random.normal(ks[15], (B, C_IN, H, W), dtype=jnp.float32)

    out = improved_global_feature_block(x, params, POOL_SIZES)
    out = jax.block_until_ready(out)

    ref = reference(x, params, POOL_SIZES)
    np.testing.assert_allclose(np.asarray(out), np.asarray(ref),
                               rtol=1e-4, atol=1e-4)
    print("KERNEL_OK")
</pallas_src>

<mosaic_0001>
module attributes {stable_mosaic.version = 11 : i64} {
  func.func @_gfb_kernel(%arg0: i32, %arg1: memref<1x4x256xf32, #tpu.memory_space<vmem>>, %arg2: memref<9x256xf32, #tpu.memory_space<vmem>>, %arg3: memref<4x16x256xf32, #tpu.memory_space<vmem>>, %arg4: memref<16x67xf32, #tpu.memory_space<vmem>>, %arg5: memref<1x8x256xf32, #tpu.memory_space<vmem>>, %arg6: memref<36x256xf32, #tpu.memory_space<vmem>>) attributes {dimension_semantics = [#tpu.dimension_semantics<parallel>], iteration_bounds = array<i64: 2>, scalar_prefetch = 0 : i64, scratch_operands = 1 : i64, tpu.core_type = #tpu.core_type<tc>, window_params = [{transform_indices = @transform_0, window_bounds = array<i64: 1, 4, 256>}, {pipeline_mode = #tpu.pipeline_mode<synchronous>, transform_indices = @transform_1, window_bounds = array<i64: 9, 256>}, {pipeline_mode = #tpu.pipeline_mode<synchronous>, transform_indices = @transform_2, window_bounds = array<i64: 4, 16, 256>}, {pipeline_mode = #tpu.pipeline_mode<synchronous>, transform_indices = @transform_3, window_bounds = array<i64: 16, 67>}, {transform_indices = @transform_4, window_bounds = array<i64: 1, 8, 256>}]} {
    %c0 = arith.constant 0 : index
    %c0_0 = arith.constant 0 : index
    %0 = vector.load %arg4[%c0, %c0_0] : memref<16x67xf32, #tpu.memory_space<vmem>>, vector<16x67xf32>
    %1 = vector.extract_strided_slice %0 {offsets = [0, 0], sizes = [8, 36], strides = [1, 1]} : vector<16x67xf32> to vector<8x36xf32>
    %2 = vector.extract_strided_slice %0 {offsets = [0, 36], sizes = [16, 8], strides = [1, 1]} : vector<16x67xf32> to vector<16x8xf32>
    %3 = vector.extract_strided_slice %0 {offsets = [0, 44], sizes = [8, 8], strides = [1, 1]} : vector<16x67xf32> to vector<8x8xf32>
    %4 = vector.extract_strided_slice %0 {offsets = [0, 52], sizes = [8, 1], strides = [1, 1]} : vector<16x67xf32> to vector<8x1xf32>
    %5 = vector.extract_strided_slice %0 {offsets = [0, 53], sizes = [16, 1], strides = [1, 1]} : vector<16x67xf32> to vector<16x1xf32>
    %6 = vector.extract_strided_slice %0 {offsets = [0, 54], sizes = [8, 1], strides = [1, 1]} : vector<16x67xf32> to vector<8x1xf32>
    %7 = vector.extract_strided_slice %0 {offsets = [0, 55], sizes = [8, 1], strides = [1, 1]} : vector<16x67xf32> to vector<8x1xf32>
    %8 = vector.extract_strided_slice %0 {offsets = [0, 56], sizes = [1, 8], strides = [1, 1]} : vector<16x67xf32> to vector<1x8xf32>
    %9 = vector.extract_strided_slice %0 {offsets = [0, 64], sizes = [1, 1], strides = [1, 1]} : vector<16x67xf32> to vector<1x1xf32>
    %10 = vector.extract_strided_slice %0 {offsets = [0, 65], sizes = [1, 1], strides = [1, 1]} : vector<16x67xf32> to vector<1x1xf32>
    %11 = vector.extract_strided_slice %0 {offsets = [0, 66], sizes = [1, 1], strides = [1, 1]} : vector<16x67xf32> to vector<1x1xf32>
    %c0_1 = arith.constant 0 : index
    %c0_2 = arith.constant 0 : index
    %c0_3 = arith.constant 0 : index
    %12 = vector.load %arg1[%c0_1, %c0_2, %c0_3] : memref<1x4x256xf32, #tpu.memory_space<vmem>>, vector<1x4x256xf32>
    %13 = vector.shape_cast %12 : vector<1x4x256xf32> to vector<4x256xf32>
    %14 = vector.extract_strided_slice %13 {offsets = [0, 239], sizes = [4, 17], strides = [1, 1]} : vector<4x256xf32> to vector<4x17xf32>
    %15 = vector.extract_strided_slice %13 {offsets = [0, 0], sizes = [4, 239], strides = [1, 1]} : vector<4x256xf32> to vector<4x239xf32>
    %16 = tpu.concatenate %14, %15 in 1 : vector<4x17xf32>, vector<4x239xf32> -> vector<4x256xf32>
    %c0_4 = arith.constant 0 : index
    %c0_5 = arith.constant 0 : index
    %17 = vector.load %arg2[%c0_4, %c0_5] : memref<9x256xf32, #tpu.memory_space<vmem>>, vector<1x256xf32>
    %18 = vector.broadcast %17 : vector<1x256xf32> to vector<4x256xf32>
    %19 = arith.mulf %16, %18 : vector<4x256xf32>
    %c0_6 = arith.constant 0 : index
    %c0_7 = arith.constant 0 : index
    %20 = vector.load %arg6[%c0_6, %c0_7] : memref<36x256xf32, #tpu.memory_space<vmem>>, vector<4x256xf32>
    tpu.vector_store %arg6[%c0_6, %c0_7], %19 {strides = array<i32>} : memref<36x256xf32, #tpu.memory_space<vmem>>, vector<4x256xf32>,
    %21 = vector.extract_strided_slice %13 {offsets = [0, 240], sizes = [4, 16], strides = [1, 1]} : vector<4x256xf32> to vector<4x16xf32>
    %22 = vector.extract_strided_slice %13 {offsets = [0, 0], sizes = [4, 240], strides = [1, 1]} : vector<4x256xf32> to vector<4x240xf32>
    %23 = tpu.concatenate %21, %22 in 1 : vector<4x16xf32>, vector<4x240xf32> -> vector<4x256xf32>
    %c1 = arith.constant 1 : index
    %c0_8 = arith.constant 0 : index
    %24 = vector.load %arg2[%c1, %c0_8] : memref<9x256xf32, #tpu.memory_space<vmem>>, vector<1x256xf32>
    %25 = vector.broadcast %24 : vector<1x256xf32> to vector<4x256xf32>
    %26 = arith.mulf %23, %25 : vector<4x256xf32>
    %c4 = arith.constant 4 : index
    %c0_9 = arith.constant 0 : index
    %27 = vector.load %arg6[%c4, %c0_9] : memref<36x256xf32, #tpu.memory_space<vmem>>, vector<4x256xf32>
    tpu.vector_store %arg6[%c4, %c0_9], %26 {strides = array<i32>} : memref<36x256xf32, #tpu.memory_space<vmem>>, vector<4x256xf32>,
    %28 = vector.extract_strided_slice %13 {offsets = [0, 241], sizes = [4, 15], strides = [1, 1]} : vector<4x256xf32> to vector<4x15xf32>
    %29 = vector.extract_strided_slice %13 {offsets = [0, 0], sizes = [4, 241], strides = [1, 1]} : vector<4x256xf32> to vector<4x241xf32>
    %30 = tpu.concatenate %28, %29 in 1 : vector<4x15xf32>, vector<4x241xf32> -> vector<4x256xf32>
    %c2 = arith.constant 2 : index
    %c0_10 = arith.constant 0 : index
    %31 = vector.load %arg2[%c2, %c0_10] : memref<9x256xf32, #tpu.memory_space<vmem>>, vector<1x256xf32>
    %32 = vector.broadcast %31 : vector<1x256xf32> to vector<4x256xf32>
    %33 = arith.mulf %30, %32 : vector<4x256xf32>
    %c8 = arith.constant 8 : index
    %c0_11 = arith.constant 0 : index
    %34 = vector.load %arg6[%c8, %c0_11] : memref<36x256xf32, #tpu.memory_space<vmem>>, vector<4x256xf32>
    tpu.vector_store %arg6[%c8, %c0_11], %33 {strides = array<i32>} : memref<36x256xf32, #tpu.memory_space<vmem>>, vector<4x256xf32>,
    %35 = vector.extract_strided_slice %13 {offsets = [0, 255], sizes = [4, 1], strides = [1, 1]} : vector<4x256xf32> to vector<4x1xf32>
    %36 = vector.extract_strided_slice %13 {offsets = [0, 0], sizes = [4, 255], strides = [1, 1]} : vector<4x256xf32> to vector<4x255xf32>
    %37 = tpu.concatenate %35, %36 in 1 : vector<4x1xf32>, vector<4x255xf32> -> vector<4x256xf32>
    %c3 = arith.constant 3 : index
    %c0_12 = arith.constant 0 : index
    %38 = vector.load %arg2[%c3, %c0_12] : memref<9x256xf32, #tpu.memory_space<vmem>>, vector<1x256xf32>
    %39 = vector.broadcast %38 : vector<1x256xf32> to vector<4x256xf32>
    %40 = arith.mulf %37, %39 : vector<4x256xf32>
    %c12 = arith.constant 12 : index
    %c0_13 = arith.constant 0 : index
    %41 = vector.load %arg6[%c12, %c0_13] : memref<36x256xf32, #tpu.memory_space<vmem>>, vector<4x256xf32>
    tpu.vector_store %arg6[%c12, %c0_13], %40 {strides = array<i32>} : memref<36x256xf32, #tpu.memory_space<vmem>>, vector<4x256xf32>,
    %c4_14 = arith.constant 4 : index
    %c0_15 = arith.constant 0 : index
    %42 = vector.load %arg2[%c4_14, %c0_15] : memref<9x256xf32, #tpu.memory_space<vmem>>, vector<1x256xf32>
    %43 = vector.broadcast %42 : vector<1x256xf32> to vector<4x256xf32>
    %44 = arith.mulf %13, %43 : vector<4x256xf32>
    %c16 = arith.constant 16 : index
    %c0_16 = arith.constant 0 : index
    %45 = vector.load %arg6[%c16, %c0_16] : memref<36x256xf32, #tpu.memory_space<vmem>>, vector<4x256xf32>
    tpu.vector_store %arg6[%c16, %c0_16], %44 {strides = array<i32>} : memref<36x256xf32, #tpu.memory_space<vmem>>, vector<4x256xf32>,
    %46 = vector.extract_strided_slice %13 {offsets = [0, 1], sizes = [4, 255], strides = [1, 1]} : vector<4x256xf32> to vector<4x255xf32>
    %47 = vector.extract_strided_slice %13 {offsets = [0, 0], sizes = [4, 1], strides = [1, 1]} : vector<4x256xf32> to vector<4x1xf32>
    %48 = tpu.concatenate %46, %47 in 1 : vector<4x255xf32>, vector<4x1xf32> -> vector<4x256xf32>
    %c5 = arith.constant 5 : index
    %c0_17 = arith.constant 0 : index
    %49 = vector.load %arg2[%c5, %c0_17] : memref<9x256xf32, #tpu.memory_space<vmem>>, vector<1x256xf32>
    %50 = vector.broadcast %49 : vector<1x256xf32> to vector<4x256xf32>
    %51 = arith.mulf %48, %50 : vector<4x256xf32>
    %c20 = arith.constant 20 : index
    %c0_18 = arith.constant 0 : index
    %52 = vector.load %arg6[%c20, %c0_18] : memref<36x256xf32, #tpu.memory_space<vmem>>, vector<4x256xf32>
    tpu.vector_store %arg6[%c20, %c0_18], %51 {strides = array<i32>} : memref<36x256xf32, #tpu.memory_space<vmem>>, vector<4x256xf32>,
    %53 = vector.extract_strided_slice %13 {offsets = [0, 15], sizes = [4, 241], strides = [1, 1]} : vector<4x256xf32> to vector<4x241xf32>
    %54 = vector.extract_strided_slice %13 {offsets = [0, 0], sizes = [4, 15], strides = [1, 1]} : vector<4x256xf32> to vector<4x15xf32>
    %55 = tpu.concatenate %53, %54 in 1 : vector<4x241xf32>, vector<4x15xf32> -> vector<4x256xf32>
    %c6 = arith.constant 6 : index
    %c0_19 = arith.constant 0 : index
    %56 = vector.load %arg2[%c6, %c0_19] : memref<9x256xf32, #tpu.memory_space<vmem>>, vector<1x256xf32>
    %57 = vector.broadcast %56 : vector<1x256xf32> to vector<4x256xf32>
    %58 = arith.mulf %55, %57 : vector<4x256xf32>
    %c24 = arith.constant 24 : index
    %c0_20 = arith.constant 0 : index
    %59 = vector.load %arg6[%c24, %c0_20] : memref<36x256xf32, #tpu.memory_space<vmem>>, vector<4x256xf32>
    tpu.vector_store %arg6[%c24, %c0_20], %58 {strides = array<i32>} : memref<36x256xf32, #tpu.memory_space<vmem>>, vector<4x256xf32>,
    %60 = vector.extract_strided_slice %13 {offsets = [0, 16], sizes = [4, 240], strides = [1, 1]} : vector<4x256xf32> to vector<4x240xf32>
    %61 = vector.extract_strided_slice %13 {offsets = [0, 0], sizes = [4, 16], strides = [1, 1]} : vector<4x256xf32> to vector<4x16xf32>
    %62 = tpu.concatenate %60, %61 in 1 : vector<4x240xf32>, vector<4x16xf32> -> vector<4x256xf32>
    %c7 = arith.constant 7 : index
    %c0_21 = arith.constant 0 : index
    %63 = vector.load %arg2[%c7, %c0_21] : memref<9x256xf32, #tpu.memory_space<vmem>>, vector<1x256xf32>
    %64 = vector.broadcast %63 : vector<1x256xf32> to vector<4x256xf32>
    %65 = arith.mulf %62, %64 : vector<4x256xf32>
    %c28 = arith.constant 28 : index
    %c0_22 = arith.constant 0 : index
    %66 = vector.load %arg6[%c28, %c0_22] : memref<36x256xf32, #tpu.memory_space<vmem>>, vector<4x256xf32>
    tpu.vector_store %arg6[%c28, %c0_22], %65 {strides = array<i32>} : memref<36x256xf32, #tpu.memory_space<vmem>>, vector<4x256xf32>,
    %67 = vector.extract_strided_slice %13 {offsets = [0, 17], sizes = [4, 239], strides = [1, 1]} : vector<4x256xf32> to vector<4x239xf32>
    %68 = vector.extract_strided_slice %13 {offsets = [0, 0], sizes = [4, 17], strides = [1, 1]} : vector<4x256xf32> to vector<4x17xf32>
    %69 = tpu.concatenate %67, %68 in 1 : vector<4x239xf32>, vector<4x17xf32> -> vector<4x256xf32>
    %c8_23 = arith.constant 8 : index
    %c0_24 = arith.constant 0 : index
    %70 = vector.load %arg2[%c8_23, %c0_24] : memref<9x256xf32, #tpu.memory_space<vmem>>, vector<1x256xf32>
    %71 = vector.broadcast %70 : vector<1x256xf32> to vector<4x256xf32>
    %72 = arith.mulf %69, %71 : vector<4x256xf32>
    %c32 = arith.constant 32 : index
    %c0_25 = arith.constant 0 : index
    %73 = vector.load %arg6[%c32, %c0_25] : memref<36x256xf32, #tpu.memory_space<vmem>>, vector<4x256xf32>
    tpu.vector_store %arg6[%c32, %c0_25], %72 {strides = array<i32>} : memref<36x256xf32, #tpu.memory_space<vmem>>, vector<4x256xf32>,
    %c0_26 = arith.constant 0 : index
    %c0_27 = arith.constant 0 : index
    %74 = vector.load %arg6[%c0_26, %c0_27] : memref<36x256xf32, #tpu.memory_space<vmem>>, vector<36x256xf32>
    %cst = arith.constant dense<0.000000e+00> : vector<8x256xf32>
    %75 = tpu.matmul %1, %74, %cst {dimension_numbers = #tpu.dot_dimension_numbers<[1], [0], [0], [1], [0, 0, 1, 1], [], []>} : vector<8x36xf32>, vector<36x256xf32>, vector<8x256xf32> -> vector<8x256xf32>
    %76 = vector.broadcast %4 : vector<8x1xf32> to vector<8x256xf32>
    %77 = arith.addf %75, %76 : vector<8x256xf32>
    %cst_28 = arith.constant 0.000000e+00 : f32
    %78 = vector.broadcast %cst_28 : f32 to vector<8x256xf32>
    %79 = arith.cmpf oge, %77, %78 : vector<8x256xf32>
    %80 = vector.broadcast %9 : vector<1x1xf32> to vector<8x256xf32>
    %81 = arith.mulf %80, %77 : vector<8x256xf32>
    %82 = arith.select %79, %77, %81 : vector<8x256xi1>, vector<8x256xf32>
    %c0_29 = arith.constant 0 : index
    %c0_30 = arith.constant 0 : index
    %c0_31 = arith.constant 0 : index
    %83 = vector.load %arg3[%c0_29, %c0_30, %c0_31] : memref<4x16x256xf32, #tpu.memory_space<vmem>>, vector<1x16x256xf32>
    %84 = vector.shape_cast %83 : vector<1x16x256xf32> to vector<16x256xf32>
    %85 = vector.extract_strided_slice %13 {offsets = [0, 0], sizes = [1, 256], strides = [1, 1]} : vector<4x256xf32> to vector<1x256xf32>
    %86 = vector.broadcast %85 : vector<1x256xf32> to vector<16x256xf32>
    %87 = arith.mulf %84, %86 : vector<16x256xf32>
    %c1_32 = arith.constant 1 : index
    %c0_33 = arith.constant 0 : index
    %c0_34 = arith.constant 0 : index
    %88 = vector.load %arg3[%c1_32, %c0_33, %c0_34] : memref<4x16x256xf32, #tpu.memory_space<vmem>>, vector<1x16x256xf32>
    %89 = vector.shape_cast %88 : vector<1x16x256xf32> to vector<16x256xf32>
    %90 = vector.extract_strided_slice %13 {offsets = [1, 0], sizes = [1, 256], strides = [1, 1]} : vector<4x256xf32> to vector<1x256xf32>
    %91 = vector.broadcast %90 : vector<1x256xf32> to vector<16x256xf32>
    %92 = arith.mulf %89, %91 : vector<16x256xf32>
    %93 = arith.addf %87, %92 : vector<16x256xf32>
    %c2_35 = arith.constant 2 : index
    %c0_36 = arith.constant 0 : index
    %c0_37 = arith.constant 0 : index
    %94 = vector.load %arg3[%c2_35, %c0_36, %c0_37] : memref<4x16x256xf32, #tpu.memory_space<vmem>>, vector<1x16x256xf32>
    %95 = vector.shape_cast %94 : vector<1x16x256xf32> to vector<16x256xf32>
    %96 = vector.extract_strided_slice %13 {offsets = [2, 0], sizes = [1, 256], strides = [1, 1]} : vector<4x256xf32> to vector<1x256xf32>
    %97 = vector.broadcast %96 : vector<1x256xf32> to vector<16x256xf32>
    %98 = arith.mulf %95, %97 : vector<16x256xf32>
    %99 = arith.addf %93, %98 : vector<16x256xf32>
    %c3_38 = arith.constant 3 : index
    %c0_39 = arith.constant 0 : index
    %c0_40 = arith.constant 0 : index
    %100 = vector.load %arg3[%c3_38, %c0_39, %c0_40] : memref<4x16x256xf32, #tpu.memory_space<vmem>>, vector<1x16x256xf32>
    %101 = vector.shape_cast %100 : vector<1x16x256xf32> to vector<16x256xf32>
    %102 = vector.extract_strided_slice %13 {offsets = [3, 0], sizes = [1, 256], strides = [1, 1]} : vector<4x256xf32> to vector<1x256xf32>
    %103 = vector.broadcast %102 : vector<1x256xf32> to vector<16x256xf32>
    %104 = arith.mulf %101, %103 : vector<16x256xf32>
    %105 = arith.addf %99, %104 : vector<16x256xf32>
    %cst_41 = arith.constant dense<0.000000e+00> : vector<16xf32>
    %106 = vector.multi_reduction <add>, %105, %cst_41 [1] : vector<16x256xf32> to vector<16xf32>
    %107 = vector.shape_cast %106 : vector<16xf32> to vector<16x1xf32>
    %108 = arith.addf %107, %5 : vector<16x1xf32>
    %cst_42 = arith.constant 0.000000e+00 : f32
    %109 = vector.broadcast %cst_42 : f32 to vector<16x1xf32>
    %110 = arith.cmpf oge, %108, %109 : vector<16x1xf32>
    %111 = vector.broadcast %10 : vector<1x1xf32> to vector<16x1xf32>
    %112 = arith.mulf %111, %108 : vector<16x1xf32>
    %113 = arith.select %110, %108, %112 : vector<16x1xi1>, vector<16x1xf32>
    %114 = vector.broadcast %113 : vector<16x1xf32> to vector<16x8xf32>
    %115 = arith.mulf %2, %114 : vector<16x8xf32>
    %cst_43 = arith.constant dense<0.000000e+00> : vector<8xf32>
    %116 = vector.multi_reduction <add>, %115, %cst_43 [0] : vector<16x8xf32> to vector<8xf32>
    %117 = vector.shape_cast %116 : vector<8xf32> to vector<1x8xf32>
    %118 = arith.addf %117, %8 : vector<1x8xf32>
    %cst_44 = arith.constant 0.000000e+00 : f32
    %119 = vector.broadcast %cst_44 : f32 to vector<1x8xf32>
    %120 = arith.cmpf oge, %118, %119 : vector<1x8xf32>
    %121 = vector.broadcast %11 : vector<1x1xf32> to vector<1x8xf32>
    %122 = arith.mulf %121, %118 : vector<1x8xf32>
    %123 = arith.select %120, %118, %122 : vector<1x8xi1>, vector<1x8xf32>
    %124 = vector.broadcast %123 : vector<1x8xf32> to vector<8x8xf32>
    %125 = arith.mulf %3, %124 : vector<8x8xf32>
    %cst_45 = arith.constant dense<0.000000e+00> : vector<8xf32>
    %126 = vector.multi_reduction <add>, %125, %cst_45 [1] : vector<8x8xf32> to vector<8xf32>
    %127 = vector.shape_cast %126 : vector<8xf32> to vector<8x1xf32>
    %128 = arith.addf %127, %6 : vector<8x1xf32>
    %cst_46 = arith.constant 0.000000e+00 : f32
    %129 = vector.broadcast %cst_46 : f32 to vector<8x1xf32>
    %130 = arith.cmpf oge, %128, %129 : vector<8x1xf32>
    %131 = arith.mulf %7, %128 : vector<8x1xf32>
    %132 = arith.select %130, %128, %131 : vector<8x1xi1>, vector<8x1xf32>
    %133 = vector.broadcast %132 : vector<8x1xf32> to vector<8x256xf32>
    %134 = arith.addf %82, %133 : vector<8x256xf32>
    %c0_47 = arith.constant 0 : index
    %c0_48 = arith.constant 0 : index
    %c0_49 = arith.constant 0 : index
    %135 = vector.load %arg5[%c0_47, %c0_48, %c0_49] : memref<1x8x256xf32, #tpu.memory_space<vmem>>, vector<1x8x256xf32>
    %136 = vector.shape_cast %135 : vector<1x8x256xf32> to vector<8x256xf32>
    %137 = vector.shape_cast %134 : vector<8x256xf32> to vector<1x8x256xf32>
    tpu.vector_store %arg5[%c0_47, %c0_48, %c0_49], %137 {strides = array<i32>} : memref<1x8x256xf32, #tpu.memory_space<vmem>>, vector<1x8x256xf32>,
    return
  }
  func.func @transform_0(%arg0: i32) -> (i32, i32, i32) {
    %c0_i32 = arith.constant 0 : i32
    %c0_i32_0 = arith.constant 0 : i32
    %c0_i32_1 = arith.constant 0 : i32
    return %arg0, %c0_i32, %c0_i32_0 : i32, i32, i32
  }
  func.func @transform_1(%arg0: i32) -> (i32, i32) {
    %c0_i32 = arith.constant 0 : i32
    %c0_i32_0 = arith.constant 0 : i32
    %c0_i32_1 = arith.constant 0 : i32
    return %c0_i32, %c0_i32_0 : i32, i32
  }
  func.func @transform_2(%arg0: i32) -> (i32, i32, i32) {
    %c0_i32 = arith.constant 0 : i32
    %c0_i32_0 = arith.constant 0 : i32
    %c0_i32_1 = arith.constant 0 : i32
    %c0_i32_2 = arith.constant 0 : i32
    return %c0_i32, %c0_i32_0, %c0_i32_1 : i32, i32, i32
  }
  func.func @transform_3(%arg0: i32) -> (i32, i32) {
    %c0_i32 = arith.constant 0 : i32
    %c0_i32_0 = arith.constant 0 : i32
    %c0_i32_1 = arith.constant 0 : i32
    return %c0_i32, %c0_i32_0 : i32, i32
  }
  func.func @transform_4(%arg0: i32) -> (i32, i32, i32) {
    %c0_i32 = arith.constant 0 : i32
    %c0_i32_0 = arith.constant 0 : i32
    %c0_i32_1 = arith.constant 0 : i32
    return %arg0, %c0_i32, %c0_i32_0 : i32, i32, i32
  }
}

</mosaic_0001>

<bundles_post_ra>
// kernel: tpu_custom_call.1
= control target key start
LH: loop header
LB: loop body
LE: loop exit
PB: predicated region body
PF: predicated region fallthrough
CT: control target
= control target key end

     0   :  { %9 = vsyncpa [#allocation4], 0  ;;  %s1543_s0 = inlined_call_operand.hbm [shape: f32[2,4,256], index: 0, kind: input, shape index: {}]   ;;  %s1544_s1 = inlined_call_operand.hbm [shape: f32[9,256], index: 1, kind: input, shape index: {}]   ;;  %s1545_s2 = inlined_call_operand.hbm [shape: f32[4,16,256], index: 2, kind: input, shape index: {}]   ;;  %s1546_s3 = inlined_call_operand.hbm [shape: f32[16,67], index: 3, kind: input, shape index: {}]   ;;  %s1547_s4 = inlined_call_operand.hbm [shape: f32[2,8,256], index: 4, kind: output, shape index: {}]  }
   0x1   :  { %11 = vsyncpa [#allocation4 + $0x1], 0 }
   0x2   :  { %12 = vsyncpa [#allocation7], 0 }
   0x3   :  { %13 = vsyncpa [#allocation10], 0 }
   0x4   :  { %14 = vsyncpa [#allocation5], 0 }
   0x5   :  { %16 = vsyncpa [#allocation5 + $0x1], 0  ;;  %s1275_s15 = smov 0   ;;  %s1277_s16 = smov 0  }
   0x6   :  { %s1279_s17 = smov 0   ;;  %s1281_s18 = smov 0  }
   0x7 LB: > { %s153_s21 = sshll.u32 %s1544_s1, 4  ;;  %s1299_s22 = sadd.s32 4294967295, %s1223_s18   ;;  %s1223_s18 = sphi %s1281_s18, %s1558_s18   ;;  %s1219_s17 = sphi %s1279_s17, %s1557_s17   ;;  %s1215_s16 = sphi %s1277_s16, %s1556_s16   ;;  %s1211_s15 = sphi %s1275_s15, %s1555_s15   ;;  %s154_s21 = int_to_ptr.hbm [resolvable:$true] %s153_s21 }
   0x8   : > { %p897_p0 = scmp.ge.s32.totalorder %s1223_s18, 1  ;;  %p43_p1 = scmp.eq.s32.totalorder %s1299_s22, 0 }
   0x9   : > { %p142_p2 = scmp.lt.s32.totalorder %s1223_s18, 3  ;;  %s1225_s24 = smov [#allocation6]  }
   0xa   : > { %s155_s25 = sshll.u32 %s1225_s24, 4  ;;  %s167_s28 = sshll.u32 %s1545_s2, 4  ;;  %s156_s25 = int_to_ptr.vmem [resolvable:$true] %s155_s25  ;;  %s168_s28 = int_to_ptr.hbm [resolvable:$true] %s167_s28 }
   0xb   : > { %p1304_p3 = pnand %p897_p0, %p142_p2  ;;  %s181_s6 = sshll.u32 %s1546_s3, 4  ;;  %s182_s6 = int_to_ptr.hbm [resolvable:$true] %s181_s6 }
   0xc   : > { %s1226_s7 = smov [#allocation8]   ;;  %s1227_s9 = smov 256  }
   0xd   : > { %p940_p4 = pneg %p1304_p3  ;;  %s169_s8 = sshll.u32 %s1226_s7, 4  ;;  %s170_s8 = int_to_ptr.vmem [resolvable:$true] %s169_s8 }
   0xe   : > { %s1228_s10 = smov 16   ;;  %s1229_s11 = smov [#allocation9]  }
   0xf   : > { %p1316_p6 = pnand %p940_p4, %p43_p1  ;;  %s183_s12 = sshll.u32 %s1229_s11, 4  ;;  %s184_s12 = int_to_ptr.vmem [resolvable:$true] %s183_s12 }
  0x10   : > { %s1230_s13 = smov 128   ;;  %s1231_s14 = smov 8  }
  0x11   : > { %943 = dma.hbm_to_vmem [thread:$0]  (!%p1316_p6), %s154_s21, 512, %s156_s25, [#allocation7], %s1227_s9, %s1227_s9, %s1228_s10  }
  0x12   : > { %946 = dma.hbm_to_vmem [thread:$0]  (!%p1316_p6), %s168_s28, 2048, %s170_s8, [#allocation7], %s1227_s9, %s1227_s9, %s1228_s10  }
  0x13   : > { %949 = dma.hbm_to_vmem [thread:$0]  (!%p1316_p6), %s182_s6, 256, %s184_s12, [#allocation10], %s1230_s13, %s1230_s13, %s1231_s14  }
  0x14   : > { %s896_s19 = sadd.s32 4294967294, %s1223_s18   ;;  %s1331_s20 = sadd.s32 1, %s1223_s18  }
  0x15   : > { %s29_s21 = sadd.s32 1, %s1219_s17  ;;  %s26_s24 = ssub.s32 %s1223_s18, %s1331_s20 }
  0x16   : > { %p36_p7 = scmp.ne.s32.totalorder %s1219_s17, %s1215_s16  ;;  %p27_p8 = scmp.eq.s32.totalorder %s26_s24, 0 }
  0x17   : > { %p37_p9 = scmp.eq.s32.totalorder %s1223_s18, 0  ;;  %p42_p10 = scmp.ne.s32.totalorder %s1215_s16, %s1211_s15 }
  0x18   : > { %p129_p11 = scmp.eq.s32.totalorder %s1299_s22, 1  ;;  %p135_p0 = scmp.eq.s32.totalorder %s896_s19, 1 }
  0x19   : > { %s1343_s25 = scalar_select %p27_p8, %s1219_s17, %s29_s21  }
  0x1a   : > { %p1347_p12 = por %p43_p1, %p42_p10  ;;  %p1351_p13 = por %p129_p11, %p36_p7 }
  0x1b   : > { %p38_p2 = por %p37_p9, %p36_p7  ;;  %s197_s28 = sand.u32 1, %s1219_s17  }
  0x1c   : > { %p1356_p4 = por %p135_p0, %p42_p10  ;;  %p961_p6 = scmp.lt.s32.totalorder %s1223_s18, 2 }
  0x1d   : > { %s902_s30 = sshll.u32 %s197_s28, 3  ;;  %s920_s5 = sshll.u32 %s1223_s18, 3 }
  0x1e   : > { %s206_s8 = scalar_lea.hbm %s1543_s0, %s920_s5  ;;  %s201_s10 = scalar_lea.vmem [#allocation3], %s902_s30 }
  0x1f   : > { %s208_s9 = sshll.u32 %s206_s8, 4  ;;  %s210_s11 = sshll.u32 %s201_s10, 4  ;;  %s209_s9 = int_to_ptr.hbm [resolvable:$true] %s208_s9  ;;  %s211_s11 = int_to_ptr.vmem [resolvable:$true] %s210_s11 }
  0x20   : > { %p1365_p8 = pnand %p961_p6, %p38_p2  ;;  %s198_s13 = scalar_lea.sflag [#allocation4], %s197_s28 }
  0x21   : > { %s1119_s14 = sshra.s32 %s209_s9, 4  ;;  %s1126_s30 = scalar_lea.hbm %s1543_s0, 16  ;;  %s1120_s14 = int_to_ptr.hbm [resolvable:$true] %s1119_s14 }
  0x22   : > { %s1121_s19 = scalar_lea.hbm %s1120_s14, 8  ;;  %p1123_p9 = pneg %p1365_p8 }
  0x23   : > { %p1122_p7 = scmp.ne.s32.totalorder %s1120_s14, %s1121_s19  ;;  %p1127_p0 = scmp.lt.s32.totalorder %s1120_s14, %s1543_s0 }
  0x24   : > { %p1128_p2 = scmp.lt.s32.totalorder %s1126_s30, %s1121_s19 }
  0x25   : > { %p1124_p10 = pnand %p1123_p9, %p1122_p7 }
  0x26   : > { %p1129_p6 = por %p1128_p2, %p1127_p0 }
  0x27   : > { %p1125_p11 = pneg %p1124_p10 }
  0x29   : > { %p1130_p5 = pnand %p1129_p6, %p1125_p11 }
  0x2b   : > { %1133 = shalt.err (!%p1130_p5)
}
  0x2c   : > { %953 = dma.hbm_to_vmem [thread:$0]  (!%p1365_p8), %s209_s9, 128, %s211_s11, %s198_s13  }
  0x2d   : > { %219 = sbr.rel (%p1304_p3) target bundleno = 1153 (0x481), region = 36  ;;  %s1382_s28 = sand.u32 (!%p1304_p3), 1, %s1215_s16  }
  0x2e   : > { %s906_s7 = sshll.u32 (!%p1304_p3), %s1382_s28, 3  ;;  %s222_s8 = scalar_lea.sflag (!%p1304_p3), [#allocation4], %s1382_s28 }
  0x2f   : > { %s225_s10 = scalar_lea.vmem (!%p1304_p3), [#allocation3], %s906_s7 }
  0x32   : > { %1194 = dma.done.wait (%p1347_p12), %s222_s8, 128  }
  0x33   : > { %1196 = vsyncadd (%p1347_p12), %s222_s8, 4294967168 }
  0x34   : > { %1198 = dma.done.wait (%p43_p1), [#allocation7], 2560  }
  0x35   : > { %1200 = vsyncadd (%p43_p1), [#allocation7], 4294964736 }
  0x36   : > { %1202 = dma.done.wait (%p43_p1), [#allocation10], 256  }
  0x37   : > { %1204 = vsyncadd (%p43_p1), [#allocation10], 4294967040  ;;  %v1398_v0 = vld [vmem:[%s225_s10] sm:$0xff]  ;;  %v610_v1 = vld [vmem:[#allocation8] sm:$0xff]  ;;  %s1232_s23 = smov 12   ;;  %s1233_s26 = smov 116  }
  0x38   : > { %v611_v2 = vld [vmem:[#allocation8 + $0x8] sm:$0xff]  ;;  %v614_v3 = vperm.slane %v1398_v0, 0  ;;  %v615_v4 = vperm.slane %v1398_v0, 4  ;;  %v625_v5 = vld [vmem:[#allocation8 + $0x20] sm:$0xff]  ;;  %v629_v7 = vperm.slane %v1398_v0, 1  ;;  %v630_v8 = vperm.slane %v1398_v0, 5 }
  0x39   : > { %v626_v6 = vld [vmem:[#allocation8 + $0x28] sm:$0xff]  ;;  %v644_v9 = vld [vmem:[#allocation8 + $0x40] sm:$0xff]  ;;  %v648_v11 = vperm.slane %v1398_v0, 2  ;;  %v649_v12 = vperm.slane %v1398_v0, 6  ;;  %v667_v14 = vperm.slane %v1398_v0, 3  ;;  %v612_v20 = vld [vmem:[#allocation8 + $0x10] sm:$0xff] }
  0x3a   : > { %v645_v10 = vld [vmem:[#allocation8 + $0x48] sm:$0xff]  ;;  %v663_v13 = vld [vmem:[#allocation8 + $0x60] sm:$0xff]  ;;  %v618_v15 = vperm.slane %v614_v3, 0  ;;  %v619_v16 = vperm.slane %v615_v4, 0  ;;  %v633_v17 = vperm.slane %v629_v7, 1  ;;  %v634_v18 = vperm.slane %v630_v8, 1 }
  0x3b   : > { %v664_v19 = vld [vmem:[#allocation8 + $0x68] sm:$0xff]  ;;  %v652_v21 = vperm.slane %v648_v11, 2  ;;  %v653_v22 = vperm.slane %v649_v12, 2  ;;  %v668_v23 = vperm.slane %v1398_v0, 7  ;;  %v671_v24 = vperm.slane %v667_v14, 3  ;;  %v613_v29 = vld [vmem:[#allocation8 + $0x18] sm:$0xff] }
  0x3c   : > { %270 = vst [vmem:[#allocation1] ss:$2 sm:$0xff] %v1398_v0  ;;  %v620_v25 = vmul.f32 %v618_v15, %v610_v1  ;;  %v621_v26 = vmul.f32 %v619_v16, %v611_v2  ;;  %v635_v27 = vmul.f32 %v633_v17, %v625_v5  ;;  %v636_v28 = vmul.f32 %v634_v18, %v626_v6  ;;  %v627_v30 = vld [vmem:[#allocation8 + $0x30] sm:$0xff]  ;;  %v628_v31 = vld [vmem:[#allocation8 + $0x38] sm:$0xff]  ;;  %v1409_v63 = vld [vmem:[#allocation9] sm:$0xff]  ;;  %s1234_s9 = smov 108  }
  0x3d   : > { %v654_v32 = vmul.f32 %v652_v21, %v644_v9  ;;  %v655_v33 = vmul.f32 %v653_v22, %v645_v10  ;;  %v672_v34 = vperm.slane %v668_v23, 3  ;;  %v673_v35 = vmul.f32 %v671_v24, %v663_v13  ;;  %v646_v36 = vld [vmem:[#allocation8 + $0x50] sm:$0xff]  ;;  %v647_v37 = vld [vmem:[#allocation8 + $0x58] sm:$0xff]  ;;  %v1412_v3 = vld [vmem:[#allocation9 + $0x8] sm:$0xff]  ;;  %s1237_s11 = smov 112   ;;  %s1238_s12 = smov 111  }
  0x3e   : > { %v639_v38 = vadd.f32 %v635_v27, %v620_v25  ;;  %v640_v39 = vadd.f32 %v636_v28, %v621_v26  ;;  %v622_v40 = vmul.f32 %v618_v15, %v612_v20  ;;  %v623_v41 = vmul.f32 %v619_v16, %v613_v29  ;;  %v665_v46 = vld [vmem:[#allocation8 + $0x70] sm:$0xff]  ;;  %v666_v47 = vld [vmem:[#allocation8 + $0x78] sm:$0xff]  ;;  %v394_v27 = vld [vmem:[#allocation6 + $0x4] ss:$8 sm:$0x3]  ;;  %s1239_s13 = smov 127  }
  0x3f   : > { %v674_v42 = vmul.f32 %v672_v34, %v664_v19  ;;  %v637_v43 = vmul.f32 %v633_v17, %v627_v30  ;;  %v638_v44 = vmul.f32 %v634_v18, %v628_v31  ;;  %v656_v45 = vmul.f32 %v652_v21, %v646_v36  ;;  %s1240_s14 = smov 113   ;;  %s1241_s19 = smov 1  }
  0x40   : > { %v658_v48 = vadd.f32 %v654_v32, %v639_v38  ;;  %v659_v49 = vadd.f32 %v655_v33, %v640_v39  ;;  %v657_v50 = vmul.f32 %v653_v22, %v647_v37  ;;  %v675_v55 = vmul.f32 %v671_v24, %v665_v46  ;;  %s1242_s21 = smov 16   ;;  %s1243_s24 = smov 8  }
  0x41   : > { %v641_v51 = vadd.f32 %v637_v43, %v622_v40  ;;  %v642_v52 = vadd.f32 %v638_v44, %v623_v41  ;;  %v676_v56 = vmul.f32 %v672_v34, %v666_v47  ;;  %v691_v6 = vperm.slane %v1409_v63, 0  ;;  %s1244_s30 = smov 15   ;;  %s1245_s5 = smov 17  }
  0x42   : > { %v677_v53 = vadd.f32 %v673_v35, %v658_v48  ;;  %v678_v54 = vadd.f32 %v674_v42, %v659_v49  ;;  %v1235_v11 = vmov 53   ;;  %v1236_v23 = vmov 66   ;;  %s1246_s6 = smov 84   ;;  %s1247_s7 = smov 64  }
  0x43   : > { %v660_v57 = vadd.f32 %v656_v45, %v641_v51  ;;  %v661_v58 = vadd.f32 %v657_v50, %v642_v52  ;;  %1023 = vset.pattern.permute.xlu0 %v1235_v11  ;;  %1024 = vset.pattern.permute.xlu1 %v1235_v11  ;;  %v1417_v12 = vld.sshfl [vmem:[#allocation1 + $0x8] sm:$0xff pattern:$0x75316420]  ;;  %v397_v28 = vperm.slane %v394_v27, 1  ;;  %v396_v29 = vperm.slane %v394_v27, 0  ;;  %s910_s10 = sshll.u32 %s1382_s28, 4 }
  0x44   : > { %v681_v59 = vadd.f32 %v678_v54, %v677_v53  ;;  %275 = vst [vmem:[#allocation1] ss:$2 sm:$0xff] %v1398_v0  ;;  %vm399_vm2 = vcmask 1043456   ;;  %vm724_vm3 = vcmask 359712   ;;  %vm480_vm5 = vcmask 916480  }
  0x45   : > { %v679_v60 = vadd.f32 %v675_v55, %v660_v57  ;;  %v680_v61 = vadd.f32 %v676_v56, %v661_v58  ;;  %v398_v30 = vrot.slane %v397_v28, 4  ;;  %vm514_vm6 = vcmask 908288  }
  0x46   : > { %682 = vadd.xlane.f32.xlu0 %v681_v59  ;;  %vm418_vm7 = vcmask 1039360   ;;  %vm452_vm8 = vcmask 924672   ;;  %vm371_vm9 = vcmask 7168   ;;  %vm309_vm10 = vcmask 130048  }
  0x47   : > { %v684_v62 = vadd.f32 %v680_v61, %v679_v60  ;;  %v400_v31 = vsel %vm399_vm2, %v396_v29, %v398_v30  ;;  %vm755_vm11 = vcmask 64512   ;;  %vm343_vm12 = vcmask 121856  }
  0x48   : > { %v402_v32 = vmul.f32 %v400_v31, %v1398_v0  ;;  %v429_v31 = vld [vmem:[#allocation6 + $0x5] ss:$8 sm:$0x3]  ;;  %vm282_vm13 = vcmask 138240   ;;  %vm550_vm14 = vcmask 293888  }
  0x4b   : > { %v1420_v13 = vld.sshfl [vmem:[#allocation1] sm:$0xff pattern:$0x75316420]  ;;  %v1422_v14 = vld.sshfl [vmem:[#allocation1 + $0x8] sm:$0xff pattern:$0x75316420] }
  0x4c   : > { %297 = vst [vmem:[#allocation1] ss:$2 sm:$0xff] %v1398_v0 }
  0x4e   : > { %685 = vadd.xlane.f32.xlu0 %v684_v62 }
  0x53   : > { %v1425_v15 = vld.sshfl [vmem:[#allocation1 + $0x8] sm:$0xff pattern:$0x75316420] }
  0x54   : > { %302 = vst [vmem:[#allocation1] ss:$2 sm:$0xff] %v1398_v0 }
  0x5b   : > { %v1428_v18 = vld.sshfl [vmem:[#allocation1] sm:$0xff pattern:$0x75316420]  ;;  %v1430_v19 = vld.sshfl [vmem:[#allocation1 + $0x8] sm:$0xff pattern:$0x75316420] }
  0x5c   : > { %331 = vst [vmem:[#allocation1] ss:$2 sm:$0xff] %v1398_v0 }
  0x63   : > { %v1433_v22 = vld.sshfl [vmem:[#allocation1 + $0x8] sm:$0xff pattern:$0x75316420] }
  0x64   : > { %336 = vst [vmem:[#allocation1] ss:$2 sm:$0xff] %v1398_v0 }
  0x6b   : > { %v1437_v24 = vld.sshfl [vmem:[#allocation1] sm:$0xff pattern:$0x75316420]  ;;  %v1439_v25 = vld.sshfl [vmem:[#allocation1 + $0x8] sm:$0xff pattern:$0x75316420] }
  0x6c   : > { %359 = vst [vmem:[#allocation1] ss:$2 sm:$0xff] %v1398_v0 }
  0x73   : > { %v360_v26 = vld.sshfl [vmem:[#allocation1 + $0x8] sm:$0xff pattern:$0x75316420] }
  0x74   : > { %364 = vst [vmem:[#allocation1] ss:$2 sm:$0xff] %v1398_v0 }
  0x7b   : > { %v1445_v33 = vld.sshfl [vmem:[#allocation1] sm:$0xff pattern:$0x75316420]  ;;  %v1447_v34 = vld.sshfl [vmem:[#allocation1 + $0x8] sm:$0xff pattern:$0x75316420] }
  0x7c   : > { %404 = vst [vmem:[#allocation1] ss:$2 sm:$0xff] %v402_v32 }
  0x83   : > { %v405_v35 = vld.sshfl [vmem:[#allocation1] sm:$0xff pattern:$0x75316420]  ;;  %v406_v36 = vld.sshfl [vmem:[#allocation1 + $0x8] sm:$0xff pattern:$0x75316420] }
  0x84   : > { %411 = vst [vmem:[#allocation1] ss:$2 sm:$0xff] %v1398_v0 }
  0x85   : > { %409 = vst [vmem:[#allocation2 + $0x48] sm:$0xf] %v405_v35 }
  0x86   : > { %410 = vst [vmem:[#allocation2 + $0x28] sm:$0xf] %v406_v36 }
  0x8b   : > { %v412_v37 = vld.sshfl [vmem:[#allocation1] sm:$0xff pattern:$0x75316420]  ;;  %v413_v38 = vld.sshfl [vmem:[#allocation1 + $0x8] sm:$0xff pattern:$0x75316420] }
  0x8c   : > { %422 = vst [vmem:[#allocation1] ss:$2 sm:$0xff] %v1398_v0 }
  0x93   : > { %v423_v39 = vld.sshfl [vmem:[#allocation1] sm:$0xff pattern:$0x75316420] }
  0x94   : > { %445 = vst [vmem:[#allocation1] ss:$2 sm:$0xff] %v1398_v0 }
  0x9b   : > { %v446_v40 = vld.sshfl [vmem:[#allocation1] sm:$0xff pattern:$0x75316420]  ;;  %v447_v41 = vld.sshfl [vmem:[#allocation1 + $0x8] sm:$0xff pattern:$0x75316420] }
  0x9c   : > { %456 = vst [vmem:[#allocation1] ss:$2 sm:$0xff] %v1398_v0 }
  0xa3   : > { %v457_v42 = vld.sshfl [vmem:[#allocation1] sm:$0xff pattern:$0x75316420] }
  0xa4   : > { %473 = vst [vmem:[#allocation1] ss:$2 sm:$0xff] %v1398_v0 }
  0xab   : > { %v475_v43 = vld.sshfl [vmem:[#allocation1 + $0x8] sm:$0xff pattern:$0x75316420]  ;;  %v474_v44 = vld.sshfl [vmem:[#allocation1] sm:$0xff pattern:$0x75316420] }
  0xac   : > { %484 = vst [vmem:[#allocation1] ss:$2 sm:$0xff] %v1398_v0 }
  0xb3   : > { %v485_v45 = vld.sshfl [vmem:[#allocation1] sm:$0xff pattern:$0x75316420] }
  0xb4   : > { %507 = vst [vmem:[#allocation1] ss:$2 sm:$0xff] %v1398_v0 }
  0xb9   : > { %v683_v1 = vpop.xlane.xlu0 %682 }
  0xba   : > { %v687_v2 = vadd.f32 %v683_v1, %v1409_v63 }
  0xbb   : > { %v508_v46 = vld.sshfl [vmem:[#allocation1] sm:$0xff pattern:$0x75316420]  ;;  %v509_v51 = vld.sshfl [vmem:[#allocation1 + $0x8] sm:$0xff pattern:$0x75316420] }
  0xbc   : > { %694 = vrot.lane.b32.xlu1 %v687_v2, %s1232_s23  ;;  %vm689_vm0 = vcmp.ge.f32.partialorder %v687_v2, 0.0  ;;  %518 = vst [vmem:[#allocation1] ss:$2 sm:$0xff] %v1398_v0 }
  0xc1   : > { %v686_v4 = vpop.xlane.xlu0 %685 }
  0xc2   : > { %v688_v5 = vadd.f32 %v686_v4, %v1412_v3 }
  0xc3   : > { %v519_v1 = vld.sshfl [vmem:[#allocation1] sm:$0xff pattern:$0x75316420] }
  0xc4   : > { %696 = vrot.lane.b32.xlu1 %v688_v5, %s1232_s23  ;;  %vm690_vm1 = vcmp.ge.f32.partialorder %v688_v5, 0.0  ;;  %s921_s23 = sshll.u32 %s1299_s22, 4  ;;  %s781_s22 = scalar_lea.sflag [#allocation5], %s1382_s28 }
 0x12e   : > { %v695_v7 = vpop.permute.xlu1 %694 }
 0x12f   : > { %v700_v8 = vmul.f32 %v695_v7, %v691_v6 }
 0x131   : > { %704 = vrot.lane.b32.xlu2 %v700_v8, %s1233_s26 }
 0x136   : > { %v697_v9 = vpop.permute.xlu1 %696 }
 0x137   : > { %v701_v10 = vmul.f32 %v697_v9, %v691_v6 }
 0x139   : > { %706 = vrot.lane.b32.xlu2 %v701_v10, %s1233_s26 }
 0x141   : > { %734 = vrot.lane.b32.xlu2 %v1409_v63, %s1234_s9 }
 0x149   : > { %476 = vrot.lane.b32.xlu2 %v474_v44, %s1237_s11 }
 0x18b   : > { %v705_v16 = vpop.permute.xlu2 %704 }
 0x18c   : > { %v710_v17 = vsel %vm689_vm0, %v687_v2, %v705_v16 }
 0x18d   : > { %714 = vperm.xlu0 %1023, %v710_v17  }
 0x193   : > { %v707_v20 = vpop.permute.xlu2 %706 }
 0x194   : > { %v711_v21 = vsel %vm690_vm1, %v688_v5, %v707_v20  ;;  %v491_v5 = vld [vmem:[#allocation6 + $0x7] ss:$8 sm:$0x3] }
 0x195   : > { %719 = vperm.xlu1 %1024, %v711_v21   ;;  %520 = vrot.lane.b32.xlu0 %v519_v1, %s1238_s12  ;;  %v493_v6 = vperm.slane %v491_v5, 0  ;;  %v494_v16 = vperm.slane %v491_v5, 1  ;;  %v525_v21 = vld [vmem:[#allocation6 + $0x10] ss:$8 sm:$0x3] }
 0x19b   : > { %v735_v60 = vpop.permute.xlu2 %734 }
 0x19d   : > { %1025 = vset.pattern.permute.xlu1 %v1236_v23  ;;  %424 = vrot.lane.b32.xlu0 %v423_v39, %s1239_s13  ;;  %v463_v39 = vld [vmem:[#allocation6 + $0x6] ss:$8 sm:$0x3] }
 0x19e   : > { %740 = vperm.xlu1 %1025, %v1409_v63  }
 0x1a3   : > { %v477_v7 = vpop.permute.xlu2 %476 }
 0x1a5   : > { %458 = vrot.lane.b32.xlu0 %v457_v42, %s1240_s14 }
 0x1a6   : > { %478 = vrot.lane.b32.xlu1 %v475_v43, %s1237_s11 }
 0x1ad   : > { %369 = vrot.lane.b32.xlu0 %v1447_v34, %s1241_s19 }
 0x1ae   : > { %510 = vrot.lane.b32.xlu1 %v508_v46, %s1238_s12  ;;  %v466_v46 = vperm.slane %v463_v39, 1 }
 0x1b5   : > { %307 = vrot.lane.b32.xlu0 %v1430_v19, %s1242_s21 }
 0x1b6   : > { %414 = vrot.lane.b32.xlu1 %v412_v37, %s1239_s13 }
 0x1bd   : > { %341 = vrot.lane.b32.xlu0 %v1439_v25, %s1244_s30  ;;  %v528_v25 = vperm.slane %v525_v21, 1 }
 0x1be   : > { %448 = vrot.lane.b32.xlu1 %v446_v40, %s1240_s14 }
 0x1c5   : > { %280 = vrot.lane.b32.xlu0 %v1422_v14, %s1245_s5 }
 0x1c6   : > { %361 = vrot.lane.b32.xlu1 %v360_v26, %s1241_s19 }
 0x1cd   : > { %601 = vrot.lane.b32.xlu0 %v1409_v63, %s1247_s7 }
 0x1ce   : > { %299 = vrot.lane.b32.xlu1 %v1425_v15, %s1242_s21 }
 0x1ff   : > { %v715_v47 = vpop.permute.xlu0 %714 }
 0x200   : > { %v722_v48 = vmul.f32 %v715_v47, %v1409_v63 }
 0x202   : > { %v725_v52 = vsel %vm724_vm3, %v722_v48, 0.0 }
 0x207   : > { %v720_v49 = vpop.permute.xlu1 %719  ;;  %v521_v27 = vpop.permute.xlu0 %520 }
 0x208   : > { %v723_v50 = vmul.f32 %v720_v49, %v1412_v3 }
 0x20a   : > { %v726_v53 = vsel %vm724_vm3, %v723_v50, 0.0 }
 0x20b   : > { %v727_v54 = vadd.f32 %v726_v53, %v725_v52  ;;  %v377_v53 = vld [vmem:[#allocation6 + $0x3] ss:$8 sm:$0x3] }
 0x20d   : > { %v728_v55 = vrot.slane %v727_v54, 4 }
 0x20f   : > { %v729_v56 = vadd.f32 %v728_v55, %v727_v54  ;;  %v425_v36 = vpop.permute.xlu0 %424  ;;  %v379_v55 = vperm.slane %v377_v53, 0 }
 0x210   : > { %v741_v62 = vpop.permute.xlu1 %740 }
 0x211   : > { %v730_v57 = vrot.slane %v729_v56, 2 }
 0x213   : > { %v731_v58 = vadd.f32 %v730_v57, %v729_v56 }
 0x215   : > { %v732_v59 = vrot.slane %v731_v58, 1 }
 0x217   : > { %v733_v61 = vadd.f32 %v732_v59, %v731_v58  ;;  %v459_v49 = vpop.permute.xlu0 %458 }
 0x218   : > { %v479_v8 = vpop.permute.xlu1 %478 }
 0x219   : > { %v737_v2 = vadd.f32 %v735_v60, %v733_v61  ;;  %v481_v9 = vsel %vm480_vm5, %v477_v7, %v479_v8  ;;  %v315_v61 = vld [vmem:[#allocation6 + $0x1] ss:$8 sm:$0x3] }
 0x21a   : > { %v497_v10 = vmul.f32 %v493_v6, %v481_v9  ;;  %v349_v9 = vld [vmem:[#allocation6 + $0x2] ss:$8 sm:$0x3] }
 0x21b   : > { %vm738_vm4 = vcmp.ge.f32.partialorder %v737_v2, 0.0  ;;  %v743_v0 = vmul.f32 %v741_v62, %v737_v2 }
 0x21c   : > { %v501_v11 = vrot.slane %v497_v10, 4 }
 0x21d   : > { %v744_v3 = vsel %vm738_vm4, %v737_v2, %v743_v0  ;;  %v317_v0 = vperm.slane %v315_v61, 0 }
 0x21e   : > { %v745_v4 = vperm.slane %v744_v3, 0  ;;  %505 = vst [vmem:[#allocation2 + $0x8] sm:$0xf0] %v501_v11  ;;  %v351_v11 = vperm.slane %v349_v9, 0 }
 0x220   : > { %747 = vrot.lane.b32.xlu2 %v745_v4, %s1243_s24  ;;  %v511_v19 = vpop.permute.xlu1 %510 }
 0x228   : > { %486 = vrot.lane.b32.xlu2 %v485_v45, %s1237_s11  ;;  %v415_v29 = vpop.permute.xlu1 %414  ;;  %v465_v45 = vperm.slane %v463_v39, 0  ;;  %s792_s11 = scalar_lea.hbm %s1547_s4, %s921_s23 }
 0x230   : > { %512 = vrot.lane.b32.xlu2 %v509_v51, %s1238_s12  ;;  %v449_v43 = vpop.permute.xlu1 %448  ;;  %s265_s12 = scalar_lea.vmem [#allocation11], %s910_s10 }
 0x238   : > { %416 = vrot.lane.b32.xlu2 %v413_v38, %s1239_s13  ;;  %v362_v54 = vpop.permute.xlu1 %361 }
 0x240   : > { %450 = vrot.lane.b32.xlu2 %v447_v41, %s1240_s14  ;;  %v300_v2 = vpop.permute.xlu1 %299  ;;  %s796_s14 = sshll.u32 %s792_s11, 4  ;;  %s797_s14 = int_to_ptr.hbm [resolvable:$true] %s796_s14 }
 0x248   : > { %367 = vrot.lane.b32.xlu2 %v1445_v33, %s1241_s19  ;;  %v432_v33 = vperm.slane %v429_v31, 1 }
 0x250   : > { %305 = vrot.lane.b32.xlu2 %v1428_v18, %s1242_s21 }
 0x258   : > { %339 = vrot.lane.b32.xlu2 %v1437_v24, %s1244_s30  ;;  %v527_v24 = vperm.slane %v525_v21, 0 }
 0x260   : > { %278 = vrot.lane.b32.xlu2 %v1420_v13, %s1245_s5 }
 0x27a   : > { %v748_v15 = vpop.permute.xlu2 %747 }
 0x27b   : > { %v750_v14 = vmul.f32 %v748_v15, %v1409_v63 }
 0x27d   : > { %752 = vrot.lane.b32.xlu1 %v750_v14, %s1246_s6 }
 0x282   : > { %v487_v17 = vpop.permute.xlu2 %486 }
 0x283   : > { %v489_v18 = vsel %vm480_vm5, %v479_v8, %v487_v17  ;;  %v287_v17 = vld [vmem:[#allocation6] ss:$8 sm:$0x3] }
 0x284   : > { %v498_v20 = vmul.f32 %v494_v16, %v489_v18  ;;  %v290_v39 = vperm.slane %v287_v17, 1 }
 0x285   : > { %333 = vrot.lane.b32.xlu1 %v1433_v22, %s1244_s30  ;;  %v431_v22 = vperm.slane %v429_v31, 0  ;;  %v318_v31 = vperm.slane %v315_v61, 1 }
 0x286   : > { %v502_v23 = vrot.slane %v498_v20, 4 }
 0x288   : > { %506 = vst [vmem:[#allocation2 + $0x20] sm:$0xf0] %v502_v23 }
 0x28a   : > { %v513_v13 = vpop.permute.xlu2 %512 }
 0x28b   : > { %v515_v26 = vsel %vm514_vm6, %v511_v19, %v513_v13  ;;  %v523_v30 = vsel %vm514_vm6, %v513_v13, %v521_v27  ;;  %v289_v19 = vperm.slane %v287_v17, 0  ;;  %v380_v13 = vperm.slane %v377_v53, 1 }
 0x28c   : > { %v531_v28 = vmul.f32 %v527_v24, %v515_v26  ;;  %v532_v32 = vmul.f32 %v528_v25, %v523_v30  ;;  %v370_v26 = vpop.permute.xlu0 %369 }
 0x28d   : > { %272 = vrot.lane.b32.xlu1 %v1417_v12, %s1245_s5  ;;  %s1169_s5 = scalar_lea.hbm %s1547_s4, 32 }
 0x28e   : > { %533 = vst [vmem:[#allocation2 + $0x40] sm:$0xf] %v531_v28 }
 0x28f   : > { %534 = vst [vmem:[#allocation2 + $0x38] sm:$0xf] %v532_v32 }
 0x292   : > { %v417_v34 = vpop.permute.xlu2 %416 }
 0x293   : > { %v419_v35 = vsel %vm418_vm7, %v415_v29, %v417_v34  ;;  %v427_v38 = vsel %vm418_vm7, %v417_v34, %v425_v36 }
 0x294   : > { %v435_v37 = vmul.f32 %v431_v22, %v419_v35  ;;  %v436_v41 = vmul.f32 %v432_v33, %v427_v38  ;;  %v308_v32 = vpop.permute.xlu0 %307  ;;  %v352_v35 = vperm.slane %v349_v9, 1 }
 0x295   : > { %v543_v40 = vld [vmem:[#allocation2 + $0x40] sm:$0xf] }
 0x296   : > { %v439_v42 = vrot.slane %v435_v37, 4  ;;  %911 = vmatpush.msk.msra.mxu0 %vm399_vm2, %v543_v40  ;;  %v544_v12 = vld [vmem:[#allocation2 + $0x38] sm:$0xf]  ;;  %v440_v44 = vrot.slane %v436_v41, 4 }
 0x297   : > { %913 = vmatpush.msk.msra.mxu1 %vm399_vm2, %v544_v12 }
 0x298   : > { %443 = vst [vmem:[#allocation2 + $0x48] sm:$0xf0] %v439_v42 }
 0x299   : > { %444 = vst [vmem:[#allocation2 + $0x28] sm:$0xf0] %v440_v44 }
 0x29a   : > { %v451_v47 = vpop.permute.xlu2 %450 }
 0x29b   : > { %v453_v48 = vsel %vm452_vm8, %v449_v43, %v451_v47  ;;  %v461_v51 = vsel %vm452_vm8, %v451_v47, %v459_v49  ;;  %v1249_v49 = vmov 54  }
 0x29c   : > { %v469_v50 = vmul.f32 %v465_v45, %v453_v48  ;;  %v470_v52 = vmul.f32 %v466_v46, %v461_v51  ;;  %v342_v36 = vpop.permute.xlu0 %341  ;;  %v1248_v46 = vmov 52   ;;  %1027 = vset.pattern.permute.xlu2 %v1249_v49 }
 0x29d   : > { %1026 = vset.pattern.permute.xlu0 %v1248_v46 }
 0x29e   : > { %471 = vst [vmem:[#allocation2 + $0x8] sm:$0xf] %v469_v50  ;;  %547 = vperm.xlu0 %1026, %v1409_v63  }
 0x29f   : > { %472 = vst [vmem:[#allocation2 + $0x20] sm:$0xf] %v470_v52  ;;  %v539_v60 = vld [vmem:[#allocation2 + $0x48] sm:$0xff] }
 0x2a0   : > { %v540_v27 = vld [vmem:[#allocation2 + $0x28] sm:$0xff] }
 0x2a2   : > { %v368_v56 = vpop.permute.xlu2 %367 }
 0x2a3   : > { %v375_v57 = vsel %vm371_vm9, %v362_v54, %v368_v56  ;;  %v372_v28 = vsel %vm371_vm9, %v368_v56, %v370_v26 }
 0x2a4   : > { %v383_v58 = vmul.f32 %v379_v55, %v375_v57  ;;  %v384_v29 = vmul.f32 %v380_v13, %v372_v28  ;;  %v281_v40 = vpop.permute.xlu0 %280 }
 0x2a5   : > { %v541_v59 = vld [vmem:[#allocation2 + $0x8] sm:$0xff] }
 0x2a6   : > { %571 = vmatpush.msra.mxu0 %v541_v59  ;;  %v542_v62 = vld [vmem:[#allocation2 + $0x20] sm:$0xff]  ;;  %v387_v1 = vrot.slane %v383_v58, 4  ;;  %v388_v30 = vrot.slane %v384_v29, 4  ;;  %1028 = vset.pattern.permute.xlu0 %v1249_v49 }
 0x2a7   : > { %591 = vmatpush.msra.mxu1 %v542_v62 }
 0x2a8   : > { %572 = vmatpush.msra.mxu0 %v539_v60  ;;  %391 = vst [vmem:[#allocation2 + $0x18] sm:$0xf0] %v387_v1 }
 0x2a9   : > { %592 = vmatpush.msra.mxu1 %v540_v27  ;;  %392 = vst [vmem:[#allocation2 + $0x10] sm:$0xf0] %v388_v30 }
 0x2aa   : > { %v306_v3 = vpop.permute.xlu2 %305 }
 0x2ab   : > { %v313_v4 = vsel %vm309_vm10, %v300_v2, %v306_v3  ;;  %v310_v22 = vsel %vm309_vm10, %v306_v3, %v308_v32 }
 0x2ac   : > { %v321_v5 = vmul.f32 %v317_v0, %v313_v4  ;;  %v322_v33 = vmul.f32 %v318_v31, %v310_v22  ;;  %v602_v50 = vpop.permute.xlu0 %601 }
 0x2ad   : > { %922 = vpush %v602_v50 }
 0x2ae   : > { %v325_v6 = vrot.slane %v321_v5, 4  ;;  %v326_v34 = vrot.slane %v322_v33, 4 }
 0x2b0   : > { %329 = vst [vmem:[#allocation2 + $0x30] sm:$0xf0] %v325_v6 }
 0x2b1   : > { %330 = vst [vmem:[#allocation2] sm:$0xf0] %v326_v34 }
 0x2b2   : > { %v340_v10 = vpop.permute.xlu2 %339 }
 0x2b3   : > { %v344_v37 = vsel %vm343_vm12, %v340_v10, %v342_v36 }
 0x2b4   : > { %v356_v38 = vmul.f32 %v352_v35, %v344_v37 }
 0x2b6   : > { %358 = vst [vmem:[#allocation2 + $0x10] sm:$0xf] %v356_v38 }
 0x2ba   : > { %v279_v18 = vpop.permute.xlu2 %278 }
 0x2bb   : > { %v283_v41 = vsel %vm282_vm13, %v279_v18, %v281_v40 }
 0x2bc   : > { %v294_v42 = vmul.f32 %v290_v39, %v283_v41 }
 0x2bd   : > { %v538_v43 = vld [vmem:[#allocation2 + $0x10] sm:$0xff] }
 0x2be   : > { %296 = vst [vmem:[#allocation2] sm:$0xf] %v294_v42  ;;  %593 = vmatpush.msra.mxu1 %v538_v43 }
 0x2c5   : > { %v536_v45 = vld [vmem:[#allocation2] sm:$0xff] }
 0x2c6   : > { %594 = vmatpush.msra.mxu1 %v536_v45 }
 0x2c7   : > { %914 = vmatmul.msk.f32.vlgmr.msra.gmra.mxu1 %vm550_vm14, %v1409_v63 }
 0x2de   : > { %s923_s8 = spop %922 }
 0x2ef   : > { %v753_v7 = vpop.permute.xlu1 %752 }
 0x2f0   : > { %v756_v8 = vsel %vm755_vm11, %v753_v7, 0.0 }
 0x2f1   : > { %757 = vadd.xlane.f32.xlu1 %v756_v8 }
 0x2f7   : > { %v334_v15 = vpop.permute.xlu1 %333 }
 0x2f8   : > { %v347_v14 = vsel %vm343_vm12, %v334_v15, %v340_v10 }
 0x2f9   : > { %v355_v16 = vmul.f32 %v351_v11, %v347_v14 }
 0x2fb   : > { %357 = vst [vmem:[#allocation2 + $0x18] sm:$0xf] %v355_v16 }
 0x2ff   : > { %v273_v20 = vpop.permute.xlu1 %272 }
 0x300   : > { %v286_v21 = vsel %vm282_vm13, %v273_v20, %v279_v18 }
 0x301   : > { %v293_v23 = vmul.f32 %v289_v19, %v286_v21 }
 0x302   : > { %v537_v24 = vld [vmem:[#allocation2 + $0x18] sm:$0xff] }
 0x303   : > { %295 = vst [vmem:[#allocation2 + $0x30] sm:$0xf] %v293_v23  ;;  %573 = vmatpush.msra.mxu0 %v537_v24 }
 0x30a   : > { %v535_v25 = vld [vmem:[#allocation2 + $0x30] sm:$0xff] }
 0x30b   : > { %574 = vmatpush.msra.mxu0 %v535_v25 }
 0x30c   : > { %912 = vmatmul.msk.f32.vlgmr.msra.gmra.mxu0 %vm550_vm14, %v1409_v63 }
 0x310   : > { %v548_v53 = vpop.permute.xlu0 %547 }
 0x344   : > { %v596_v55 = vpop.f32.mrf.mxu1 }
 0x345   : > { %v597_v57 = vadd.f32 %v596_v55, %v548_v53 }
 0x347   : > { %vm600_vm1 = vcmp.ge.f32.partialorder %v597_v57, 0.0 }
 0x364   : > { %v758_v12 = vpop.xlane.xlu1 %757 }
 0x365   : > { %v759_v44 = vadd.f32 %v758_v12, %v1409_v63 }
 0x367   : > { %762 = vrot.lane.b32.xlu2 %v759_v44, %s1241_s19  ;;  %vm760_vm15 = vcmp.ge.f32.partialorder %v759_v44, 0.0  ;;  %s1163_s19 = sshra.s32 %s797_s14, 4  ;;  %s1164_s19 = int_to_ptr.hbm [resolvable:$true] %s1163_s19 }
 0x368   : > { %s1165_s21 = scalar_lea.hbm %s1164_s19, 16  ;;  %p1170_p12 = scmp.lt.s32.totalorder %s1164_s19, %s1547_s4 }
 0x369   : > { %p1166_p1 = scmp.ne.s32.totalorder %s1164_s19, %s1165_s21  ;;  %p1171_p8 = scmp.lt.s32.totalorder %s1169_s5, %s1165_s21 }
 0x36b   : > { %p1167_p3 = pnand %p1166_p1, %p1351_p13  ;;  %p1172_p7 = por %p1171_p8, %p1170_p12 }
 0x36d   : > { %p1168_p5 = pneg %p1167_p3 }
 0x36f   : > { %p1173_p9 = pnand %p1172_p7, %p1168_p5 }
 0x389   : > { %v576_v54 = vpop.f32.mrf.mxu0 }
 0x38a   : > { %v577_v56 = vadd.f32 %v576_v54, %v548_v53 }
 0x38c   : > { %vm599_vm0 = vcmp.ge.f32.partialorder %v577_v56, 0.0 }
 0x3c1   : > { %v763_v47 = vpop.permute.xlu2 %762 }
 0x3c2   : > { %v765_v48 = vmul.f32 %v763_v47, %v1409_v63  ;;  %v604_v63 = vstv %s923_s8 }
 0x3c3   : > { %v606_v58 = vmul.f32 %v604_v63, %v577_v56  ;;  %v607_v59 = vmul.f32 %v604_v63, %v597_v57 }
 0x3c4   : > { %767 = vrot.lane.b32.xlu2 %v765_v48, %s1239_s13  ;;  %s794_s13 = sshll.u32 %s265_s12, 4  ;;  %s795_s13 = int_to_ptr.vmem [resolvable:$true] %s794_s13 }
 0x3c5   : > { %v608_v61 = vsel %vm599_vm0, %v577_v56, %v606_v58  ;;  %v609_v62 = vsel %vm600_vm1, %v597_v57, %v607_v59 }
 0x41e   : > { %v768_v51 = vpop.permute.xlu2 %767 }
 0x41f   : > { %v770_v52 = vsel %vm760_vm15, %v759_v44, %v768_v51 }
 0x420   : > { %773 = vperm.xlu2 %1027, %v770_v52  }
 0x47a   : > { %v774_v60 = vpop.permute.xlu2 %773 }
 0x47b   : > { %v776_v1 = vadd.f32 %v774_v60, %v608_v61  ;;  %v777_v2 = vadd.f32 %v774_v60, %v609_v62 }
 0x47d   : > { %778 = vst [vmem:[%s265_s12] sm:$0xff] %v776_v1 }
 0x47e   : > { %779 = vst [vmem:[%s265_s12 + $0x8] sm:$0xff] %v777_v2 }
 0x47f   : > { %1176 = shalt.err (!%p1173_p9)
}
 0x480   : > { %938 = dma.vmem_to_hbm [thread:$0]  (%p1351_p13), %s795_s13, 256, %s797_s14, %s781_s22  }
 0x481 PF: > { %s808_s28 = sand.u32 1, %s1211_s15   ;;  %p1554_p10 = scmp.ge.s32.totalorder %s1223_s18, 2 }
 0x482   : > { %s809_s8 = scalar_lea.sflag [#allocation5], %s808_s28 }
 0x483   : > { %p955_p11 = pnand %p1554_p10, %p1356_p4 }
 0x485   : > { %p956_p0 = pneg %p955_p11 }
 0x487   : > { %1206 = dma.done.wait (%p956_p0), %s809_s8, 256  }
 0x488   : > { %1208 = vsyncadd (%p956_p0), %s809_s8, 4294967040  ;;  %p19_p2 = scmp.ge.s32.totalorder %s1331_s20, 4   ;;  %s1555_s15 = smov %s1215_s16 }
 0x489   : > { %s1556_s16 = smov %s1219_s17  ;;  %s1557_s17 = smov %s1343_s25 }
 0x48a   : > { %s1558_s18 = smov %s1331_s20  ;;  %21 = sbr.rel (!%p19_p2) target bundleno = 7 (0x7), region = 104 }
 0x48f   :  { %815 = vsyncpa [#allocation4], 1 }
 0x490   :  { %817 = vsyncpa [#allocation4 + $0x1], 1 }
 0x491   :  { %818 = vsyncpa [#allocation7], 1 }
 0x492   :  { %819 = vsyncpa [#allocation10], 1 }
 0x493   :  { %820 = vsyncpa [#allocation5], 1 }
 0x494   :  { %822 = vsyncpa [#allocation5 + $0x1], 1 }

</bundles_post_ra>
